<compile_context>
chip_gen: v6e
topology: v6e:2x2x1
jax: 0.10.0
libtpu: 0.0.40
codegen_flags: <defaults>
</compile_context>

<pallas_src>
import functools
import math

import jax
import jax.numpy as jnp
from jax.experimental import pallas as pl
from jax.experimental.pallas import tpu as pltpu

LEAKY_SLOPE = 0.01  # torch.nn.LeakyReLU default negative_slope


def _leaky_relu(x):
    # slope in (0,1) => max(x, slope*x) == LeakyReLU(x); one VALU op.
    return jnp.maximum(x, LEAKY_SLOPE * x)


def _make_policy_kernel(na2, ss):
    """Fused MLP + heads kernel, closed over static head widths."""

    def policy_kernel(s_ref, w1_ref, b1_ref, w2_ref, b2_ref, w3h_ref, b3h_ref,
                      mask_ref, out_ref):
        # Layer 1: positional encoding already folded into w1 -> input is the
        # flattened state (Bp, S*S).  bf16 operands, f32 accumulation.
        s = s_ref[...].astype(jnp.bfloat16)
        h = jnp.dot(s, w1_ref[...], preferred_element_type=jnp.float32) + b1_ref[...]
        h = _leaky_relu(h)
        h = jnp.dot(h.astype(jnp.bfloat16), w2_ref[...],
                    preferred_element_type=jnp.float32) + b2_ref[...]
        h = _leaky_relu(h)

        # Layer 3 folded into the heads: single lane-dense (heads_pad=128)
        # matmul covering action + selection (+ zero padding).
        heads = jnp.dot(h.astype(jnp.bfloat16), w3h_ref[...],
                        preferred_element_type=jnp.float32) + b3h_ref[...]

        col = jax.lax.broadcasted_iota(jnp.int32, heads.shape, 1)
        is_action = col < na2
        is_sel = (col >= na2) & (col < na2 + ss)

        # --- Action head: softmax over the first `na2` columns only. ---
        a_logits = jnp.where(is_action, heads, -1e30)
        m = jnp.max(a_logits, axis=-1, keepdims=True)
        e = jnp.exp(a_logits - m)                 # non-action lanes underflow to 0
        denom = jnp.sum(e, axis=-1, keepdims=True)
        probs = e * pl.reciprocal(denom, approx=True)       # EUP slot

        # --- Selection head: masked Categorical log-weights, torch-style. ---
        # valid (unmasked) cells get their raw linear output as an unnormalized
        # probability; if every valid weight is exactly 0, fall back to uniform;
        # non-positive weights get zero mass (-1e30 log-prob).
        valid = is_sel & (mask_ref[...] == 0.0)
        weights = jnp.where(valid, heads, 0.0)
        n_valid = jnp.sum(valid.astype(jnp.float32), axis=-1, keepdims=True)
        # all-zero support check via sum of |w| over valid lanes (no bool reduce).
        has_nonzero = jnp.sum(jnp.where(valid, jnp.abs(heads), 0.0),
                              axis=-1, keepdims=True) > 0.0
        inv_n = pl.reciprocal(jnp.maximum(n_valid, 1.0), approx=True)
        weights = jnp.where((~has_nonzero) & valid, inv_n, weights)
        sel_logp = jnp.where(valid & (weights > 0.0),
                             jnp.log(jnp.maximum(weights, 1e-30)), -1e30)

        out_ref[...] = jnp.where(is_action, probs,
                                 jnp.where(is_sel, sel_logp, 0.0))

    return policy_kernel


def create_positional_encoding(size, dim):
    """Matches EnhancedMLPForwardPolicy.create_positional_encoding.

    Note: like the PyTorch code, the encoding varies only along the second
    (width) axis and is constant along the first (the torch repeat is over the
    leading axis)."""
    position = jnp.arange(size, dtype=jnp.float32)[:, None]            # (size, 1)
    div_term = jnp.exp(jnp.arange(0, dim, 2, dtype=jnp.float32)
                       * -(math.log(10000.0) / dim))                    # (dim/2,)
    sin = jnp.sin(position * div_term)                                  # (size, dim/2)
    cos = jnp.cos(position * div_term)                                  # (size, dim/2)
    enc = jnp.zeros((size, size, dim), dtype=jnp.float32)
    enc = enc.at[:, :, 0::2].set(jnp.broadcast_to(sin[None], (size, size, dim // 2)))
    enc = enc.at[:, :, 1::2].set(jnp.broadcast_to(cos[None], (size, size, dim // 2)))
    return enc


def _build_forward(state_dim, num_actions, ff_d, ff4, heads_pad, use_selection):
    """Builds one jitted forward function (weights passed as arguments)."""
    SS = state_dim * state_dim
    na2 = num_actions * 2
    kernel = _make_policy_kernel(na2, SS)

    def fwd(w1f, b1, w2, b2, w3h, b3h, state, mask, sample_key):
        B = state.shape[0]
        Bp = max(8, ((B + 7) // 8) * 8)                  # fill f32 sublanes
        s_flat = state.reshape(B, SS).astype(jnp.float32)
        s_pad = jnp.pad(s_flat, ((0, Bp - B), (0, 0)))

        # Mask slab aligned with the head columns: 1.0 = unavailable everywhere
        # except the selection columns of real rows, which carry the user mask.
        flat_mask = mask.reshape(B, SS)                  # True = unavailable
        mask_slab = jnp.pad(flat_mask.astype(jnp.float32),
                            ((0, Bp - B), (na2, heads_pad - na2 - SS)),
                            constant_values=1.0)

        flops = 2 * Bp * (SS * ff_d + ff_d * ff4 + ff4 * heads_pad)
        bytes_accessed = ((s_pad.size + mask_slab.size) * 4
                          + (w1f.size + w2.size + w3h.size) * 2
                          + (b1.size + b2.size + b3h.size) * 4
                          + Bp * heads_pad * 4)
        transcendentals = Bp * (heads_pad + SS + 2)      # exp slab + log + 2 recips

        vspec = pl.BlockSpec(memory_space=pltpu.MemorySpace.VMEM)
        out = pl.pallas_call(
            kernel,
            out_shape=jax.ShapeDtypeStruct((Bp, heads_pad), jnp.float32),
            in_specs=[vspec] * 8,
            out_specs=vspec,
            cost_estimate=pl.CostEstimate(
                flops=int(flops),
                transcendentals=int(transcendentals),
                bytes_accessed=int(bytes_accessed)),
        )(s_pad, w1f, b1, w2, b2, w3h, b3h, mask_slab)

        action_probs = out[:B, :na2]
        if not use_selection:
            return action_probs, mask

        # Sampling stays outside the kernel to preserve jax.random semantics.
        # TODO(synk): torch's Categorical(probs) is undefined for negative
        # values; a masked softmax over sel_logits may be the intended spec.
        sel_logp = out[:B, na2:na2 + SS]
        idx = jax.random.categorical(sample_key, sel_logp, axis=-1)     # (B,)
        coordinate = jnp.stack([idx // state_dim, idx % state_dim], axis=-1)
        return action_probs, coordinate

    return jax.jit(fwd)


class EnhancedMLPForwardPolicy:
    def __init__(self, state_dim, hidden_dim, num_actions, batch_size,
                 embedding_dim=64, ep_len=3, use_selection=True,
                 key=jax.random.PRNGKey(0)):
        self.state_dim = state_dim
        self.hidden_dim = hidden_dim
        self.num_actions = num_actions
        self.batch_size = batch_size
        self.embedding_dim = embedding_dim
        self.use_selection = use_selection
        self.episode_length = ep_len + 1

        self.positional_encoding = create_positional_encoding(state_dim, embedding_dim)

        f_d = state_dim * state_dim * embedding_dim
        ff_d = embedding_dim * hidden_dim
        ff4 = ff_d // 4
        dims = [f_d, ff_d, ff4, hidden_dim]

        def linear_params(k, d_in, d_out):
            # deterministic init, same scheme as torch.nn.Linear (U(-1/sqrt(in), 1/sqrt(in)))
            kw, kb = jax.random.split(k)
            bound = 1.0 / math.sqrt(d_in)
            W = jax.random.uniform(kw, (d_in, d_out), jnp.float32, -bound, bound)
            b = jax.random.uniform(kb, (1, d_out), jnp.float32, -bound, bound)
            return W, b

        keys = jax.random.split(key, 5)
        w1, b1 = linear_params(keys[0], dims[0], dims[1])
        w2, b2 = linear_params(keys[1], dims[1], dims[2])
        w3, b3 = linear_params(keys[2], dims[2], dims[3])
        wa, ba = linear_params(keys[3], hidden_dim, num_actions * 2)
        ws, bs = linear_params(keys[4], hidden_dim, state_dim * state_dim)

        # ---- Fold positional encoding into W1 (exact algebraic rewrite) ----
        SS = state_dim * state_dim
        pos_flat = self.positional_encoding.reshape(SS, embedding_dim)
        w1f = jnp.einsum('pe,pej->pj', pos_flat,
                         w1.reshape(SS, embedding_dim, ff_d))           # (SS, ff_d)

        # ---- Fuse the heads into one lane-padded matmul, then fold layer 3
        # into it (no activation after layer 3, so this is exact; done in f32,
        # quantized to bf16 only at the end). ----
        na2 = num_actions * 2
        heads_total = na2 + SS
        heads_pad = ((heads_total + 127) // 128) * 128
        wh = jnp.concatenate([wa, ws], axis=1)                          # (hid, na2+SS)
        wh = jnp.pad(wh, ((0, 0), (0, heads_pad - heads_total)))
        bh = jnp.concatenate([ba, bs], axis=1)
        bh = jnp.pad(bh, ((0, 0), (0, heads_pad - heads_total)))
        w3h = w3 @ wh                                                   # (ff4, heads_pad)
        b3h = b3 @ wh + bh                                              # (1, heads_pad)
        self.heads_pad = heads_pad

        # bf16 weights (half the DMA bytes, native MXU dtype); f32 biases.
        self.w1f = w1f.astype(jnp.bfloat16)
        self.w2 = w2.astype(jnp.bfloat16)
        self.w3h = w3h.astype(jnp.bfloat16)
        self.b1, self.b2, self.b3h = b1, b2, b3h

        self._forward = _build_forward(state_dim, num_actions, ff_d, ff4,
                                       heads_pad, use_selection)

    def forward(self, state, mask=None, sample_key=jax.random.PRNGKey(1)):
        if mask is None:
            mask = jnp.zeros((state.shape[0], self.state_dim, self.state_dim),
                             dtype=bool)
        return self._forward(self.w1f, self.b1, self.w2, self.b2,
                             self.w3h, self.b3h, state, mask, sample_key)


if __name__ == "__main__":
    # Small, module-consistent shapes.
    batch_size = 2
    state_dim = 4
    hidden_dim = 32
    num_actions = 4
    embedding_dim = 32

    policy = EnhancedMLPForwardPolicy(
        state_dim=state_dim, hidden_dim=hidden_dim, num_actions=num_actions,
        batch_size=batch_size, embedding_dim=embedding_dim, ep_len=3,
        use_selection=True, key=jax.random.PRNGKey(0))

    k_state, k_sample = jax.random.split(jax.random.PRNGKey(0))
    state = jax.random.uniform(k_state, (batch_size, state_dim, state_dim),
                               dtype=jnp.float32)
    # Deterministic mask with a few occupied cells (True = unavailable).
    mask = jnp.zeros((batch_size, state_dim, state_dim), dtype=bool)
    mask = mask.at[0, 0, 0].set(True).at[0, 1, 2].set(True).at[1, 3, 3].set(True)

    action_probs, coordinate = policy.forward(state, mask, sample_key=k_sample)
    action_probs = jax.block_until_ready(action_probs)
    coordinate = jax.block_until_ready(coordinate)

    assert action_probs.shape == (batch_size, num_actions * 2)
    assert coordinate.shape == (batch_size, 2)
    # approx reciprocal (EUP) => softmax rows sum to 1 within ~1e-3.
    assert bool(jnp.allclose(jnp.sum(action_probs, axis=-1), 1.0, atol=5e-3))
    assert bool(jnp.all(action_probs >= 0.0))
    assert bool(jnp.all((coordinate >= 0) & (coordinate < state_dim)))
    # Sampled coordinates must land on unmasked cells.
    picked_masked = mask[jnp.arange(batch_size), coordinate[:, 0], coordinate[:, 1]]
    assert not bool(jnp.any(picked_masked))

    print("KERNEL_OK")
</pallas_src>

<mosaic_0001>
module attributes {stable_mosaic.version = 11 : i64} {
  func.func @policy_kernel(%arg0: memref<8x16xf32, #tpu.memory_space<vmem>>, %arg1: memref<16x1024xbf16, #tpu.memory_space<vmem>>, %arg2: memref<1x1024xf32, #tpu.memory_space<vmem>>, %arg3: memref<1024x256xbf16, #tpu.memory_space<vmem>>, %arg4: memref<1x256xf32, #tpu.memory_space<vmem>>, %arg5: memref<256x128xbf16, #tpu.memory_space<vmem>>, %arg6: memref<1x128xf32, #tpu.memory_space<vmem>>, %arg7: memref<8x128xf32, #tpu.memory_space<vmem>>, %arg8: memref<8x128xf32, #tpu.memory_space<vmem>>) attributes {dimension_semantics = [], scalar_prefetch = 0 : i64, scratch_operands = 0 : i64, tpu.core_type = #tpu.core_type<tc>} {
    %c0 = arith.constant 0 : index
    %c0_0 = arith.constant 0 : index
    %0 = vector.load %arg0[%c0, %c0_0] : memref<8x16xf32, #tpu.memory_space<vmem>>, vector<8x16xf32>
    %1 = arith.truncf %0 : vector<8x16xf32> to vector<8x16xbf16>
    %c0_1 = arith.constant 0 : index
    %c0_2 = arith.constant 0 : index
    %2 = vector.load %arg1[%c0_1, %c0_2] : memref<16x1024xbf16, #tpu.memory_space<vmem>>, vector<16x1024xbf16>
    %cst = arith.constant dense<0.000000e+00> : vector<8x1024xf32>
    %3 = tpu.matmul %1, %2, %cst {dimension_numbers = #tpu.dot_dimension_numbers<[1], [0], [0], [1], [0, 0, 1, 1], [], []>} : vector<8x16xbf16>, vector<16x1024xbf16>, vector<8x1024xf32> -> vector<8x1024xf32>
    %c0_3 = arith.constant 0 : index
    %c0_4 = arith.constant 0 : index
    %4 = vector.load %arg2[%c0_3, %c0_4] : memref<1x1024xf32, #tpu.memory_space<vmem>>, vector<1x1024xf32>
    %5 = vector.broadcast %4 : vector<1x1024xf32> to vector<8x1024xf32>
    %6 = arith.addf %3, %5 : vector<8x1024xf32>
    %cst_5 = arith.constant 0.00999999977 : f32
    %7 = vector.broadcast %cst_5 : f32 to vector<8x1024xf32>
    %8 = arith.mulf %7, %6 : vector<8x1024xf32>
    %9 = arith.maximumf %6, %8 : vector<8x1024xf32>
    %10 = arith.truncf %9 : vector<8x1024xf32> to vector<8x1024xbf16>
    %c0_6 = arith.constant 0 : index
    %c0_7 = arith.constant 0 : index
    %11 = vector.load %arg3[%c0_6, %c0_7] : memref<1024x256xbf16, #tpu.memory_space<vmem>>, vector<1024x256xbf16>
    %cst_8 = arith.constant dense<0.000000e+00> : vector<8x256xf32>
    %12 = tpu.matmul %10, %11, %cst_8 {dimension_numbers = #tpu.dot_dimension_numbers<[1], [0], [0], [1], [0, 0, 1, 1], [], []>} : vector<8x1024xbf16>, vector<1024x256xbf16>, vector<8x256xf32> -> vector<8x256xf32>
    %c0_9 = arith.constant 0 : index
    %c0_10 = arith.constant 0 : index
    %13 = vector.load %arg4[%c0_9, %c0_10] : memref<1x256xf32, #tpu.memory_space<vmem>>, vector<1x256xf32>
    %14 = vector.broadcast %13 : vector<1x256xf32> to vector<8x256xf32>
    %15 = arith.addf %12, %14 : vector<8x256xf32>
    %cst_11 = arith.constant 0.00999999977 : f32
    %16 = vector.broadcast %cst_11 : f32 to vector<8x256xf32>
    %17 = arith.mulf %16, %15 : vector<8x256xf32>
    %18 = arith.maximumf %15, %17 : vector<8x256xf32>
    %19 = arith.truncf %18 : vector<8x256xf32> to vector<8x256xbf16>
    %c0_12 = arith.constant 0 : index
    %c0_13 = arith.constant 0 : index
    %20 = vector.load %arg5[%c0_12, %c0_13] : memref<256x128xbf16, #tpu.memory_space<vmem>>, vector<256x128xbf16>
    %cst_14 = arith.constant dense<0.000000e+00> : vector<8x128xf32>
    %21 = tpu.matmul %19, %20, %cst_14 {dimension_numbers = #tpu.dot_dimension_numbers<[1], [0], [0], [1], [0, 0, 1, 1], [], []>} : vector<8x256xbf16>, vector<256x128xbf16>, vector<8x128xf32> -> vector<8x128xf32>
    %c0_15 = arith.constant 0 : index
    %c0_16 = arith.constant 0 : index
    %22 = vector.load %arg6[%c0_15, %c0_16] : memref<1x128xf32, #tpu.memory_space<vmem>>, vector<1x128xf32>
    %23 = vector.broadcast %22 : vector<1x128xf32> to vector<8x128xf32>
    %24 = arith.addf %21, %23 : vector<8x128xf32>
    %25 = tpu.iota {dimensions = array<i32: 1>} : vector<8x128xi32>
    %c8_i32 = arith.constant 8 : i32
    %26 = vector.broadcast %c8_i32 : i32 to vector<8x128xi32>
    %27 = arith.cmpi slt, %25, %26 : vector<8x128xi32>
    %c8_i32_17 = arith.constant 8 : i32
    %28 = vector.broadcast %c8_i32_17 : i32 to vector<8x128xi32>
    %29 = arith.cmpi sge, %25, %28 : vector<8x128xi32>
    %c24_i32 = arith.constant 24 : i32
    %30 = vector.broadcast %c24_i32 : i32 to vector<8x128xi32>
    %31 = arith.cmpi slt, %25, %30 : vector<8x128xi32>
    %32 = arith.andi %29, %31 : vector<8x128xi1>
    %cst_18 = arith.constant -1.000000e+30 : f32
    %33 = vector.broadcast %cst_18 : f32 to vector<8x128xf32>
    %34 = arith.select %27, %24, %33 : vector<8x128xi1>, vector<8x128xf32>
    %cst_19 = arith.constant dense<0xFF800000> : vector<8xf32>
    %35 = vector.multi_reduction <maximumf>, %34, %cst_19 [1] : vector<8x128xf32> to vector<8xf32>
    %36 = vector.shape_cast %35 : vector<8xf32> to vector<8x1xf32>
    %37 = vector.broadcast %36 : vector<8x1xf32> to vector<8x128xf32>
    %38 = arith.subf %34, %37 : vector<8x128xf32>
    %39 = math.exp %38 : vector<8x128xf32>
    %cst_20 = arith.constant dense<0.000000e+00> : vector<8xf32>
    %40 = vector.multi_reduction <add>, %39, %cst_20 [1] : vector<8x128xf32> to vector<8xf32>
    %41 = vector.shape_cast %40 : vector<8xf32> to vector<8x1xf32>
    %42 = tpu.reciprocal %41 {approx = true} : vector<8x1xf32> -> vector<8x1xf32>
    %43 = vector.broadcast %42 : vector<8x1xf32> to vector<8x128xf32>
    %44 = arith.mulf %39, %43 : vector<8x128xf32>
    %c0_21 = arith.constant 0 : index
    %c0_22 = arith.constant 0 : index
    %45 = vector.load %arg7[%c0_21, %c0_22] : memref<8x128xf32, #tpu.memory_space<vmem>>, vector<8x128xf32>
    %cst_23 = arith.constant 0.000000e+00 : f32
    %46 = vector.broadcast %cst_23 : f32 to vector<8x128xf32>
    %47 = arith.cmpf oeq, %45, %46 : vector<8x128xf32>
    %48 = arith.andi %32, %47 : vector<8x128xi1>
    %cst_24 = arith.constant 0.000000e+00 : f32
    %49 = vector.broadcast %cst_24 : f32 to vector<8x128xf32>
    %50 = arith.select %48, %24, %49 : vector<8x128xi1>, vector<8x128xf32>
    %51 = arith.extui %48 : vector<8x128xi1> to vector<8x128xi32>
    %52 = arith.sitofp %51 : vector<8x128xi32> to vector<8x128xf32>
    %cst_25 = arith.constant dense<0.000000e+00> : vector<8xf32>
    %53 = vector.multi_reduction <add>, %52, %cst_25 [1] : vector<8x128xf32> to vector<8xf32>
    %54 = vector.shape_cast %53 : vector<8xf32> to vector<8x1xf32>
    %55 = math.absf %24 : vector<8x128xf32>
    %cst_26 = arith.constant 0.000000e+00 : f32
    %56 = vector.broadcast %cst_26 : f32 to vector<8x128xf32>
    %57 = arith.select %48, %55, %56 : vector<8x128xi1>, vector<8x128xf32>
    %cst_27 = arith.constant dense<0.000000e+00> : vector<8xf32>
    %58 = vector.multi_reduction <add>, %57, %cst_27 [1] : vector<8x128xf32> to vector<8xf32>
    %59 = vector.shape_cast %58 : vector<8xf32> to vector<8x1xf32>
    %cst_28 = arith.constant 0.000000e+00 : f32
    %60 = vector.broadcast %cst_28 : f32 to vector<8x1xf32>
    %61 = arith.cmpf ogt, %59, %60 : vector<8x1xf32>
    %cst_29 = arith.constant 1.000000e+00 : f32
    %62 = vector.broadcast %cst_29 : f32 to vector<8x1xf32>
    %63 = arith.maximumf %54, %62 : vector<8x1xf32>
    %64 = tpu.reciprocal %63 {approx = true} : vector<8x1xf32> -> vector<8x1xf32>
    %cst_30 = arith.constant dense<true> : vector<8x1xi1>
    %65 = arith.xori %61, %cst_30 : vector<8x1xi1>
    %66 = vector.broadcast %65 : vector<8x1xi1> to vector<8x128xi1>
    %67 = arith.andi %66, %48 : vector<8x128xi1>
    %68 = vector.shape_cast %64 : vector<8x1xf32> to vector<8x1xf32>
    %69 = vector.broadcast %68 : vector<8x1xf32> to vector<8x128xf32>
    %70 = arith.select %67, %69, %50 : vector<8x128xi1>, vector<8x128xf32>
    %cst_31 = arith.constant 0.000000e+00 : f32
    %71 = vector.broadcast %cst_31 : f32 to vector<8x128xf32>
    %72 = arith.cmpf ogt, %70, %71 : vector<8x128xf32>
    %73 = arith.andi %48, %72 : vector<8x128xi1>
    %cst_32 = arith.constant 1.000000e-30 : f32
    %74 = vector.broadcast %cst_32 : f32 to vector<8x128xf32>
    %75 = arith.maximumf %70, %74 : vector<8x128xf32>
    %76 = math.log %75 : vector<8x128xf32>
    %cst_33 = arith.constant -1.000000e+30 : f32
    %77 = vector.broadcast %cst_33 : f32 to vector<8x128xf32>
    %78 = arith.select %73, %76, %77 : vector<8x128xi1>, vector<8x128xf32>
    %cst_34 = arith.constant 0.000000e+00 : f32
    %79 = vector.broadcast %cst_34 : f32 to vector<8x128xf32>
    %80 = arith.select %32, %78, %79 : vector<8x128xi1>, vector<8x128xf32>
    %81 = arith.select %27, %44, %80 : vector<8x128xi1>, vector<8x128xf32>
    %c0_35 = arith.constant 0 : index
    %c0_36 = arith.constant 0 : index
    %82 = vector.load %arg8[%c0_35, %c0_36] : memref<8x128xf32, #tpu.memory_space<vmem>>, vector<8x128xf32>
    tpu.vector_store %arg8[%c0_35, %c0_36], %81 {strides = array<i32>} : memref<8x128xf32, #tpu.memory_space<vmem>>, vector<8x128xf32>,
    return
  }
}

</mosaic_0001>

<bundles_post_ra>
// kernel: fwd.1
= control target key start
LH: loop header
LB: loop body
LE: loop exit
PB: predicated region body
PF: predicated region fallthrough
CT: control target
= control target key end

     0   :  { %13 = vsyncpa [#allocation3], 0  ;;  %s2151_s0 = inlined_call_operand.vmem [shape: f32[8,16], index: 0, kind: input, shape index: {}]   ;;  %s2152_s1 = inlined_call_operand.hbm [shape: bf16[16,1024], index: 1, kind: input, shape index: {}]   ;;  %s2153_s2 = inlined_call_operand.vmem [shape: f32[1,1024], index: 2, kind: input, shape index: {}]   ;;  %s2154_s3 = inlined_call_operand.hbm [shape: bf16[1024,256], index: 3, kind: input, shape index: {}]   ;;  %s2155_s4 = inlined_call_operand.vmem [shape: f32[1,256], index: 4, kind: input, shape index: {}]   ;;  %s2156_s5 = inlined_call_operand.hbm [shape: bf16[256,128], index: 5, kind: input, shape index: {}]   ;;  %s2157_s6 = inlined_call_operand.vmem [shape: f32[1,128], index: 6, kind: input, shape index: {}]   ;;  %s2158_s7 = inlined_call_operand.vmem [shape: f32[8,128], index: 7, kind: input, shape index: {}]   ;;  %s2159_s8 = inlined_call_operand.vmem [shape: f32[8,128], index: 8, kind: output, shape index: {}]  }
   0x1   :  { %14 = vsyncpa [#allocation5], 0  ;;  %s2003_s27 = smov [#allocation4]  }
   0x2   :  { %s36_s28 = sshll.u32 %s2003_s27, 4  ;;  %s37_s28 = int_to_ptr.vmem [resolvable:$true] %s36_s28 }
   0x3   :  { %s1947_s29 = scalar_lea.vmem %s37_s28, 16384  ;;  %p1952_p1 = scmp.lt.s32.totalorder %s37_s28, %s37_s28 }
   0x4   :  { %p1948_p0 = scmp.ne.s32.totalorder %s37_s28, %s1947_s29  ;;  %p1953_p2 = scmp.lt.s32.totalorder %s1947_s29, %s1947_s29 }
   0x6   :  { %p1954_p3 = por %p1953_p2, %p1952_p1 }
   0x8   :  { %p1955_p4 = pnand %p1954_p3, %p1948_p0 }
   0xa   :  { %1958 = shalt.err (!%p1955_p4)
}
   0xb   :  { %s2004_s30 = smov 128   ;;  %s2005_s9 = smov 8  }
   0xc   :  { %42 = dma.hbm_to_vmem [thread:$0]  %s2154_s3, 16384, %s37_s28, [#allocation5], %s2004_s30, %s2004_s30, %s2005_s9  }
   0xd   :  { %s2006_s12 = smov [#allocation2]  }
   0xe   :  { %s22_s13 = sshll.u32 %s2006_s12, 4  ;;  %s23_s13 = int_to_ptr.vmem [resolvable:$true] %s22_s13 }
   0xf   :  { %s1967_s14 = scalar_lea.vmem %s23_s13, 1024  ;;  %p1972_p6 = scmp.lt.s32.totalorder %s23_s13, %s23_s13 }
  0x10   :  { %p1968_p5 = scmp.ne.s32.totalorder %s23_s13, %s1967_s14  ;;  %p1973_p7 = scmp.lt.s32.totalorder %s1967_s14, %s1967_s14 }
  0x12   :  { %p1974_p8 = por %p1973_p7, %p1972_p6 }
  0x14   :  { %p1975_p9 = pnand %p1974_p8, %p1968_p5 }
  0x16   :  { %1978 = shalt.err (!%p1975_p9)
}
  0x17   :  { %s2007_s15 = smov 512   ;;  %s2008_s16 = smov 32  }
  0x18   :  { %28 = dma.hbm_to_vmem [thread:$0]  %s2152_s1, 1024, %s23_s13, [#allocation3], %s2007_s15, %s2007_s15, %s2008_s16  }
  0x19   :  { %s2009_s19 = smov [#allocation6]  }
  0x1a   :  { %s50_s20 = sshll.u32 %s2009_s19, 4  ;;  %s51_s20 = int_to_ptr.vmem [resolvable:$true] %s50_s20 }
  0x1b   :  { %s1987_s3 = scalar_lea.vmem %s51_s20, 2048  ;;  %p1992_p11 = scmp.lt.s32.totalorder %s51_s20, %s51_s20 }
  0x1c   :  { %p1988_p10 = scmp.ne.s32.totalorder %s51_s20, %s1987_s3  ;;  %p1993_p12 = scmp.lt.s32.totalorder %s1987_s3, %s1987_s3 }
  0x1e   :  { %p1994_p13 = por %p1993_p12, %p1992_p11 }
  0x20   :  { %p1995_p0 = pnand %p1994_p13, %p1988_p10 }
  0x22   :  { %1998 = shalt.err (!%p1995_p0)
}
  0x23   :  { %s2010_s21 = smov 64   ;;  %s2011_s22 = smov 4  }
  0x24   :  { %56 = dma.hbm_to_vmem [thread:$0]  %s2156_s5, 2048, %s51_s20, [#allocation5], %s2010_s21, %s2010_s21, %s2011_s22  }
  0x25   :  { %1999 = dma.done.wait [#allocation3], 1024  }
  0x26   :  { %2000 = vsyncadd [#allocation3], 4294966272 }
  0x27   :  { %2001 = dma.done.wait [#allocation5], 18432  }
  0x28   :  { %2002 = vsyncadd [#allocation5], 4294948864  ;;  %v2012_v0 = vmov 0   ;;  %v73_v1 = vld [vmem:[#allocation2] sm:$0xff]  ;;  %v74_v6 = vld [vmem:[#allocation2 + $0x8] sm:$0xff]  ;;  %vm163_vm0 = vcmask 130048  }
  0x29   :  { %199 = vmatprep.mubr.bf16.mxu1 %v2012_v0  ;;  %v77_v2 = vld [vmem:[#allocation2 + $0x20] sm:$0xff]  ;;  %v78_v7 = vld [vmem:[#allocation2 + $0x28] sm:$0xff]  ;;  %v75_v9 = vld [vmem:[#allocation2 + $0x10] sm:$0xff]  ;;  %vm2014_vm8 = vmmov 1  }
  0x2a   :  { %v71_v3 = vld [vmem:[%s2151_s0] sm:$0xff]  ;;  %v1532_v4 = vcombine.high %v73_v1, %v77_v2  ;;  %v1531_v5 = vcombine.low %v73_v1, %v77_v2  ;;  %v1534_v8 = vcombine.high %v74_v6, %v78_v7  ;;  %v79_v10 = vld [vmem:[#allocation2 + $0x30] sm:$0xff]  ;;  %v1533_v13 = vcombine.low %v74_v6, %v78_v7  ;;  %v76_v19 = vld [vmem:[#allocation2 + $0x18] sm:$0xff] }
  0x2b   :  { %v72_v11 = vpack.c.bf16 %v71_v3, %v71_v3  ;;  %v1723_v12 = vld [vmem:[#allocation4 + $0x74] ss:$8 sps:$4 sm:$0xff]   ;;  %v1725_v14 = vld [vmem:[#allocation4 + $0x70] ss:$8 sps:$4 sm:$0xff]   ;;  %v1536_v15 = vcombine.high %v75_v9, %v79_v10  ;;  %v1726_v16 = vld [vmem:[#allocation4 + $0x64] ss:$8 sps:$4 sm:$0xff]   ;;  %v1535_v23 = vcombine.low %v75_v9, %v79_v10 }
  0x2c   :  { %181 = vmatprep.subr.bf16.mxu1 %v1532_v4  ;;  %1135 = vmatprep.subr.bf16.mxu0 %v1723_v12  ;;  %v1728_v17 = vld [vmem:[#allocation4 + $0x60] ss:$8 sps:$4 sm:$0xff]   ;;  %v1729_v18 = vld [vmem:[#allocation4 + $0x54] ss:$8 sps:$4 sm:$0xff]   ;;  %v1734_v21 = vld [vmem:[#allocation4 + $0x50] ss:$8 sps:$4 sm:$0xff]  }
  0x2d   :  { %182 = vmatpush1.bf16.msra.mxu1 %v1531_v5  ;;  %1136 = vmatpush1.bf16.msra.mxu0 %v1725_v14  ;;  %v80_v20 = vld [vmem:[#allocation2 + $0x38] sm:$0xff]  ;;  %v1735_v22 = vld [vmem:[#allocation4 + $0x44] ss:$8 sps:$4 sm:$0xff]   ;;  %v1740_v25 = vld [vmem:[#allocation4 + $0x40] ss:$8 sps:$4 sm:$0xff]  }
  0x2e   :  { %222 = vmatprep.subr.bf16.mxu1 %v1534_v8  ;;  %1137 = vmatprep.subr.bf16.mxu0 %v1726_v16  ;;  %v1538_v24 = vcombine.high %v76_v19, %v80_v20  ;;  %v1741_v26 = vld [vmem:[#allocation4 + $0x34] ss:$8 sps:$4 sm:$0xff]   ;;  %v1746_v27 = vld [vmem:[#allocation4 + $0x30] ss:$8 sps:$4 sm:$0xff]   ;;  %v1747_v28 = vld [vmem:[#allocation4 + $0x24] ss:$8 sps:$4 sm:$0xff]   ;;  %v1537_v29 = vcombine.low %v76_v19, %v80_v20 }
  0x2f   :  { %v1733_v30 = vld [vmem:[#allocation4 + $0x174] ss:$8 sps:$4 sm:$0xff]   ;;  %v1752_v31 = vld [vmem:[#allocation4 + $0x20] ss:$8 sps:$4 sm:$0xff]   ;;  %v1758_v33 = vld [vmem:[#allocation4 + $0x10] ss:$8 sps:$4 sm:$0xff]  }
  0x30   :  { %1539 = vmatmul.mubr.msk.bf16.vlgmr.msra.gmra.mxu1 %vm163_vm0, %v72_v11  ;;  %v1753_v32 = vld [vmem:[#allocation4 + $0x14] ss:$8 sps:$4 sm:$0xff]   ;;  %v1759_v34 = vld [vmem:[#allocation4 + $0x4] ss:$8 sps:$4 sm:$0xff]   ;;  %v1731_v35 = vld [vmem:[#allocation4 + $0x170] ss:$8 sps:$4 sm:$0xff]  }
  0x31   :  { %223 = vmatpush1.bf16.msra.mxu1 %v1533_v13  ;;  %240 = vmatprep.mubr.bf16.mxu1 %v2012_v0  ;;  %v1739_v36 = vld [vmem:[#allocation4 + $0x164] ss:$8 sps:$4 sm:$0xff]   ;;  %v1764_v37 = vld [vmem:[#allocation4] ss:$8 sps:$4 sm:$0xff]   ;;  %v1765_v38 = vld [vmem:[#allocation4 + $0xf4] ss:$8 sps:$4 sm:$0xff]  }
  0x32   :  { %263 = vmatprep.subr.bf16.mxu1 %v1536_v15  ;;  %1138 = vmatpush1.bf16.msra.mxu0 %v1728_v17  ;;  %v1737_v39 = vld [vmem:[#allocation4 + $0x160] ss:$8 sps:$4 sm:$0xff]   ;;  %v1745_v40 = vld [vmem:[#allocation4 + $0x154] ss:$8 sps:$4 sm:$0xff]   ;;  %v1743_v41 = vld [vmem:[#allocation4 + $0x150] ss:$8 sps:$4 sm:$0xff]  }
  0x33   :  { %1139 = vmatprep.subr.bf16.mxu0 %v1729_v18  ;;  %v1770_v42 = vld [vmem:[#allocation4 + $0xf0] ss:$8 sps:$4 sm:$0xff]   ;;  %v1771_v43 = vld [vmem:[#allocation4 + $0xe4] ss:$8 sps:$4 sm:$0xff]   ;;  %v1776_v45 = vld [vmem:[#allocation4 + $0xe0] ss:$8 sps:$4 sm:$0xff]  }
  0x34   :  { %v1751_v44 = vld [vmem:[#allocation4 + $0x144] ss:$8 sps:$4 sm:$0xff]   ;;  %v1777_v46 = vld [vmem:[#allocation4 + $0xd4] ss:$8 sps:$4 sm:$0xff]   ;;  %v1749_v47 = vld [vmem:[#allocation4 + $0x140] ss:$8 sps:$4 sm:$0xff]  }
  0x35   :  { %v1757_v48 = vld [vmem:[#allocation4 + $0x134] ss:$8 sps:$4 sm:$0xff]   ;;  %v1782_v49 = vld [vmem:[#allocation4 + $0xd0] ss:$8 sps:$4 sm:$0xff]   ;;  %v1783_v50 = vld [vmem:[#allocation4 + $0xc4] ss:$8 sps:$4 sm:$0xff]  }
  0x36   :  { %1140 = vmatpush1.bf16.msra.mxu0 %v1734_v21  ;;  %v1755_v51 = vld [vmem:[#allocation4 + $0x130] ss:$8 sps:$4 sm:$0xff]   ;;  %v1763_v52 = vld [vmem:[#allocation4 + $0x124] ss:$8 sps:$4 sm:$0xff]   ;;  %v1788_v53 = vld [vmem:[#allocation4 + $0xc0] ss:$8 sps:$4 sm:$0xff]   ;;  %v83_v21 = vlaneseq }
  0x37   :  { %1141 = vmatprep.subr.bf16.mxu0 %v1735_v22  ;;  %v1789_v54 = vld [vmem:[#allocation4 + $0xb4] ss:$8 sps:$4 sm:$0xff]   ;;  %v1761_v55 = vld [vmem:[#allocation4 + $0x120] ss:$8 sps:$4 sm:$0xff]   ;;  %v1794_v57 = vld [vmem:[#allocation4 + $0xb0] ss:$8 sps:$4 sm:$0xff]  }
  0x38   :  { %1540 = vmatmul.mubr.msk.bf16.vlgmr.msra.gmra.mxu1 %vm163_vm0, %v72_v11  ;;  %v1769_v56 = vld [vmem:[#allocation4 + $0x114] ss:$8 sps:$4 sm:$0xff]   ;;  %v1795_v58 = vld [vmem:[#allocation4 + $0xa4] ss:$8 sps:$4 sm:$0xff]   ;;  %v1767_v59 = vld [vmem:[#allocation4 + $0x110] ss:$8 sps:$4 sm:$0xff]  }
  0x39   :  { %264 = vmatpush1.bf16.msra.mxu1 %v1535_v23  ;;  %281 = vmatprep.mubr.bf16.mxu1 %v2012_v0  ;;  %v1775_v60 = vld [vmem:[#allocation4 + $0x104] ss:$8 sps:$4 sm:$0xff]   ;;  %v1773_v61 = vld [vmem:[#allocation4 + $0x100] ss:$8 sps:$4 sm:$0xff]   ;;  %v1781_v62 = vld [vmem:[#allocation4 + $0x1f4] ss:$8 sps:$4 sm:$0xff]  }
  0x3a   :  { %304 = vmatprep.subr.bf16.mxu1 %v1538_v24  ;;  %1142 = vmatpush1.bf16.msra.mxu0 %v1740_v25  ;;  %v1779_v63 = vld [vmem:[#allocation4 + $0x1f0] ss:$8 sps:$4 sm:$0xff]   ;;  %v1785_v1 = vld [vmem:[#allocation4 + $0x1e0] ss:$8 sps:$4 sm:$0xff]   ;;  %v1793_v2 = vld [vmem:[#allocation4 + $0x1d4] ss:$8 sps:$4 sm:$0xff]  }
  0x3b   :  { %1143 = vmatprep.subr.bf16.mxu0 %v1741_v26  ;;  %v1791_v3 = vld [vmem:[#allocation4 + $0x1d0] ss:$8 sps:$4 sm:$0xff]   ;;  %v1799_v4 = vld [vmem:[#allocation4 + $0x1c4] ss:$8 sps:$4 sm:$0xff]   ;;  %v1800_v5 = vld [vmem:[#allocation4 + $0xa0] ss:$8 sps:$4 sm:$0xff]  }
  0x3c   :  { %v1797_v6 = vld [vmem:[#allocation4 + $0x1c0] ss:$8 sps:$4 sm:$0xff]   ;;  %v1801_v7 = vld [vmem:[#allocation4 + $0x94] ss:$8 sps:$4 sm:$0xff]   ;;  %v1806_v9 = vld [vmem:[#allocation4 + $0x90] ss:$8 sps:$4 sm:$0xff]  }
  0x3d   :  { %v1805_v8 = vld [vmem:[#allocation4 + $0x1b4] ss:$8 sps:$4 sm:$0xff]   ;;  %v1803_v10 = vld [vmem:[#allocation4 + $0x1b0] ss:$8 sps:$4 sm:$0xff]   ;;  %v1811_v12 = vld [vmem:[#allocation4 + $0x1a4] ss:$8 sps:$4 sm:$0xff]  }
  0x3e   :  { %1144 = vmatpush1.bf16.msra.mxu0 %v1746_v27  ;;  %v1812_v13 = vld [vmem:[#allocation4 + $0x80] ss:$8 sps:$4 sm:$0xff]   ;;  %v1818_v15 = vld [vmem:[#allocation4 + $0x274] ss:$8 sps:$4 sm:$0xff]   ;;  %v1813_v17 = vld [vmem:[#allocation4 + $0x190] ss:$8 sps:$4 sm:$0xff]  }
  0x3f   :  { %1145 = vmatprep.subr.bf16.mxu0 %v1747_v28  ;;  %v1809_v14 = vld [vmem:[#allocation4 + $0x1a0] ss:$8 sps:$4 sm:$0xff]   ;;  %v1815_v16 = vld [vmem:[#allocation4 + $0x194] ss:$8 sps:$4 sm:$0xff]   ;;  %v1821_v18 = vld [vmem:[#allocation4 + $0x184] ss:$8 sps:$4 sm:$0xff]  }
  0x40   :  { %1541 = vmatmul.mubr.msk.bf16.vlgmr.msra.gmra.mxu1 %vm163_vm0, %v72_v11  ;;  %v1819_v19 = vld [vmem:[#allocation4 + $0x180] ss:$8 sps:$4 sm:$0xff]   ;;  %v1830_v20 = vld [vmem:[#allocation4 + $0x374] ss:$8 sps:$4 sm:$0xff]   ;;  %v2077_v22 = vshrl.u32 %v83_v21, 7 }
  0x41   :  { %305 = vmatpush1.bf16.msra.mxu1 %v1537_v29  ;;  %322 = vmatprep.mubr.bf16.mxu1 %v2012_v0  ;;  %v1787_v0 = vld [vmem:[#allocation4 + $0x1e4] ss:$8 sps:$4 sm:$0xff]  }
  0x42   :  { %1176 = vmatprep.subr.bf16.mxu1 %v1733_v30  ;;  %1146 = vmatpush1.bf16.msra.mxu0 %v1752_v31  ;;  %v85_v23 = vsub.s32 0, %v2077_v22  ;;  %v2083_v24 = vld [vmem:[%s2153_s2] sm:$0xff]  ;;  %v89_v25 = vsub.s32 1, %v2077_v22  ;;  %v93_v30 = vsub.s32 2, %v2077_v22 }
  0x43   :  { %1147 = vmatprep.subr.bf16.mxu0 %v1753_v32 }
  0x44   :  { %v86_v26 = vrot.slane %v2083_v24, %v85_v23  ;;  %v90_v27 = vrot.slane %v2083_v24, %v89_v25 }
  0x46   :  { %1148 = vmatpush1.bf16.msra.mxu0 %v1758_v33 }
  0x47   :  { %1149 = vmatprep.subr.bf16.mxu0 %v1759_v34  ;;  %v97_v34 = vsub.s32 3, %v2077_v22 }
  0x48   :  { %1542 = vmatmul.mubr.msk.bf16.vlgmr.msra.gmra.mxu1 %vm163_vm0, %v72_v11  ;;  %v1807_v11 = vld [vmem:[#allocation4 + $0x84] ss:$8 sps:$4 sm:$0xff]  }
  0x49   :  { %1177 = vmatpush1.bf16.msra.mxu1 %v1731_v35 }
  0x4a   :  { %1178 = vmatprep.subr.bf16.mxu1 %v1739_v36  ;;  %1150 = vmatpush1.bf16.msra.mxu0 %v1764_v37  ;;  %v94_v36 = vrot.slane %v2083_v24, %v93_v30  ;;  %v1846_v30 = vld [vmem:[#allocation4 + $0x340] ss:$8 sps:$4 sm:$0xff]  }
  0x4b   :  { %1151 = vmatprep.subr.bf16.mxu0 %v1765_v38 }
  0x4d   :  { %1179 = vmatpush1.bf16.msra.mxu1 %v1737_v39 }
  0x4e   :  { %1180 = vmatprep.subr.bf16.mxu1 %v1745_v40  ;;  %1152 = vmatpush2.bf16.msra.mxu0 %v1770_v42  ;;  %v98_v40 = vrot.slane %v2083_v24, %v97_v34 }
  0x4f   :  { %1153 = vmatprep.subr.bf16.mxu0 %v1771_v43 }
  0x51   :  { %1181 = vmatpush1.bf16.msra.mxu1 %v1743_v41 }
  0x52   :  { %1182 = vmatprep.subr.bf16.mxu1 %v1751_v44  ;;  %1154 = vmatpush2.bf16.msra.mxu0 %v1776_v45  ;;  %v1816_v45 = vld [vmem:[#allocation4 + $0x270] ss:$8 sps:$4 sm:$0xff]  }
  0x53   :  { %1155 = vmatprep.subr.bf16.mxu0 %v1777_v46 }
  0x55   :  { %1183 = vmatpush1.bf16.msra.mxu1 %v1749_v47 }
  0x56   :  { %1184 = vmatprep.subr.bf16.mxu1 %v1757_v48  ;;  %1156 = vmatpush2.bf16.msra.mxu0 %v1782_v49  ;;  %v1824_v48 = vld [vmem:[#allocation4 + $0x264] ss:$8 sps:$4 sm:$0xff]  }
  0x57   :  { %1157 = vmatprep.subr.bf16.mxu0 %v1783_v50 }
  0x59   :  { %1185 = vmatpush1.bf16.msra.mxu1 %v1755_v51  ;;  %v105_v51 = vsub.s32 5, %v2077_v22 }
  0x5a   :  { %1186 = vmatprep.subr.bf16.mxu1 %v1763_v52  ;;  %1158 = vmatpush2.bf16.msra.mxu0 %v1788_v53 }
  0x5b   :  { %1159 = vmatprep.subr.bf16.mxu0 %v1789_v54  ;;  %v1822_v54 = vld [vmem:[#allocation4 + $0x260] ss:$8 sps:$4 sm:$0xff]  }
  0x5d   :  { %1187 = vmatpush1.bf16.msra.mxu1 %v1761_v55 }
  0x5e   :  { %1188 = vmatprep.subr.bf16.mxu1 %v1769_v56  ;;  %1160 = vmatpush2.bf16.msra.mxu0 %v1794_v57  ;;  %v1827_v57 = vld [vmem:[#allocation4 + $0x254] ss:$8 sps:$4 sm:$0xff]  }
  0x5f   :  { %1161 = vmatprep.subr.bf16.mxu0 %v1795_v58 }
  0x61   :  { %1189 = vmatpush1.bf16.msra.mxu1 %v1767_v59  ;;  %v106_v59 = vrot.slane %v2083_v24, %v105_v51  ;;  %v1875_v51 = vld [vmem:[#allocation4 + $0x2d4] ss:$8 sps:$4 sm:$0xff]  }
  0x62   :  { %1190 = vmatprep.subr.bf16.mxu1 %v1775_v60  ;;  %1162 = vmatpush2.bf16.msra.mxu0 %v1800_v5  ;;  %v113_v5 = vsub.s32 7, %v2077_v22 }
  0x63   :  { %1163 = vmatprep.subr.bf16.mxu0 %v1801_v7  ;;  %v1831_v7 = vld [vmem:[#allocation4 + $0x240] ss:$8 sps:$4 sm:$0xff]  }
  0x65   :  { %1191 = vmatpush1.bf16.msra.mxu1 %v1773_v61 }
  0x66   :  { %1192 = vmatprep.subr.bf16.mxu1 %v1781_v62  ;;  %1164 = vmatpush2.bf16.msra.mxu0 %v1806_v9  ;;  %v1825_v62 = vld [vmem:[#allocation4 + $0x250] ss:$8 sps:$4 sm:$0xff]  }
  0x67   :  { %1165 = vmatprep.subr.bf16.mxu0 %v1807_v11  ;;  %v1842_v11 = vld [vmem:[#allocation4 + $0x354] ss:$8 sps:$4 sm:$0xff]  }
  0x69   :  { %1193 = vmatpush2.bf16.msra.mxu1 %v1779_v63  ;;  %v1828_v63 = vld [vmem:[#allocation4 + $0x370] ss:$8 sps:$4 sm:$0xff]  }
  0x6a   :  { %1194 = vmatprep.subr.bf16.mxu1 %v1787_v0  ;;  %1166 = vmatpush2.bf16.msra.mxu0 %v1812_v13 }
  0x6b   :  { %1217 = vmatprep.subr.bf16.mxu0 %v1818_v15 }
  0x6d   :  { %1195 = vmatpush2.bf16.msra.mxu1 %v1785_v1  ;;  %v1833_v1 = vld [vmem:[#allocation4 + $0x244] ss:$8 sps:$4 sm:$0xff]  }
  0x6e   :  { %1196 = vmatprep.subr.bf16.mxu1 %v1793_v2  ;;  %v1836_v2 = vld [vmem:[#allocation4 + $0x364] ss:$8 sps:$4 sm:$0xff]  }
  0x71   :  { %1197 = vmatpush2.bf16.msra.mxu1 %v1791_v3 }
  0x72   :  { %1198 = vmatprep.subr.bf16.mxu1 %v1799_v4 }
  0x75   :  { %1199 = vmatpush2.bf16.msra.mxu1 %v1797_v6 }
  0x76   :  { %1200 = vmatprep.subr.bf16.mxu1 %v1805_v8  ;;  %v1834_v8 = vld [vmem:[#allocation4 + $0x360] ss:$8 sps:$4 sm:$0xff]  }
  0x79   :  { %1201 = vmatpush2.bf16.msra.mxu1 %v1803_v10  ;;  %v1839_v10 = vld [vmem:[#allocation4 + $0x234] ss:$8 sps:$4 sm:$0xff]  }
  0x7a   :  { %1202 = vmatprep.subr.bf16.mxu1 %v1811_v12 }
  0x7d   :  { %1203 = vmatpush2.bf16.msra.mxu1 %v1809_v14  ;;  %v114_v14 = vrot.slane %v2083_v24, %v113_v5  ;;  %v1894_v5 = vld [vmem:[#allocation4 + $0x3c0] ss:$8 sps:$4 sm:$0xff]  }
  0x7e   :  { %1204 = vmatprep.subr.bf16.mxu1 %v1815_v16  ;;  %v1837_v16 = vld [vmem:[#allocation4 + $0x230] ss:$8 sps:$4 sm:$0xff]  }
  0x81   :  { %1205 = vmatpush2.bf16.msra.mxu1 %v1813_v17  ;;  %v1840_v17 = vld [vmem:[#allocation4 + $0x350] ss:$8 sps:$4 sm:$0xff]  }
  0x82   :  { %1206 = vmatprep.subr.bf16.mxu1 %v1821_v18 }
  0x85   :  { %1207 = vmatpush2.bf16.msra.mxu1 %v1819_v19  ;;  %v1845_v19 = vld [vmem:[#allocation4 + $0x224] ss:$8 sps:$4 sm:$0xff]  }
  0x86   :  { %1258 = vmatprep.subr.bf16.mxu1 %v1830_v20  ;;  %v1848_v20 = vld [vmem:[#allocation4 + $0x344] ss:$8 sps:$4 sm:$0xff]  }
  0xf0   :  { %v201_v28 = vpop.f32.mrf.mxu1 }
  0xf1   :  { %v202_v29 = vadd.f32 %v201_v28, %v86_v26 }
  0xf2   :  { %v203_v31 = vpop.f32.mrf.mxu1 }
  0xf3   :  { %v331_v32 = vmul.f32 0.01, %v202_v29  ;;  %v204_v33 = vadd.f32 %v203_v31, %v90_v27 }
  0xf4   :  { %v205_v35 = vpop.f32.mrf.mxu1 }
  0xf5   :  { %v332_v37 = vmul.f32 0.01, %v204_v33  ;;  %v339_v38 = vmax.f32 %v202_v29, %v331_v32  ;;  %v1843_v29 = vld [vmem:[#allocation4 + $0x220] ss:$8 sps:$4 sm:$0xff]   ;;  %v1851_v32 = vld [vmem:[#allocation4 + $0x214] ss:$8 sps:$4 sm:$0xff]  }
  0xf6   :  { %v206_v39 = vpop.f32.mrf.mxu1 }
  0xf7   :  { %v340_v41 = vmax.f32 %v204_v33, %v332_v37  ;;  %v347_v46 = vpack.c.bf16 %v339_v38, %v339_v38  ;;  %v1854_v33 = vld [vmem:[#allocation4 + $0x334] ss:$8 sps:$4 sm:$0xff]   ;;  %v1852_v37 = vld [vmem:[#allocation4 + $0x330] ss:$8 sps:$4 sm:$0xff]   ;;  %v1857_v39 = vld [vmem:[#allocation4 + $0x204] ss:$8 sps:$4 sm:$0xff]  }
  0xf8   :  { %v242_v42 = vpop.f32.mrf.mxu1 }
  0xf9   :  { %v243_v43 = vadd.f32 %v242_v42, %v94_v36  ;;  %v348_v44 = vpack.c.bf16 %v340_v41, %v340_v41  ;;  %v1849_v36 = vld [vmem:[#allocation4 + $0x210] ss:$8 sps:$4 sm:$0xff]   ;;  %v1855_v41 = vld [vmem:[#allocation4 + $0x200] ss:$8 sps:$4 sm:$0xff]  }
  0xfa   :  { %v244_v47 = vpop.f32.mrf.mxu1  ;;  %v1858_v42 = vld [vmem:[#allocation4 + $0x320] ss:$8 sps:$4 sm:$0xff]  }
  0xfb   :  { %v333_v49 = vmul.f32 0.01, %v243_v43  ;;  %v245_v50 = vadd.f32 %v244_v47, %v98_v40  ;;  %1167 = vmatprep.mubr.bf16.mxu0 %v348_v44  ;;  %v1860_v40 = vld [vmem:[#allocation4 + $0x324] ss:$8 sps:$4 sm:$0xff]   ;;  %v1866_v44 = vld [vmem:[#allocation4 + $0x314] ss:$8 sps:$4 sm:$0xff]  }
  0xfc   :  { %v246_v52 = vpop.f32.mrf.mxu1  ;;  %1168 = vmatmul.mubr.bf16.vlgmr.msra.gmra.mxu0 %v347_v46  ;;  %v1864_v46 = vld [vmem:[#allocation4 + $0x310] ss:$8 sps:$4 sm:$0xff]   ;;  %v1869_v47 = vld [vmem:[#allocation4 + $0x2e4] ss:$8 sps:$4 sm:$0xff]  }
  0xfd   :  { %v334_v53 = vmul.f32 0.01, %v245_v50  ;;  %1218 = vmatpush1.bf16.msra.mxu0 %v1816_v45  ;;  %v341_v55 = vmax.f32 %v243_v43, %v333_v49  ;;  %v1863_v43 = vld [vmem:[#allocation4 + $0x2f4] ss:$8 sps:$4 sm:$0xff]   ;;  %v1861_v45 = vld [vmem:[#allocation4 + $0x2f0] ss:$8 sps:$4 sm:$0xff]  }
  0xfe   :  { %v247_v56 = vpop.f32.mrf.mxu1  ;;  %1219 = vmatprep.subr.bf16.mxu0 %v1824_v48  ;;  %v1872_v48 = vld [vmem:[#allocation4 + $0x304] ss:$8 sps:$4 sm:$0xff]   ;;  %v1867_v49 = vld [vmem:[#allocation4 + $0x2e0] ss:$8 sps:$4 sm:$0xff]   ;;  %v1878_v52 = vld [vmem:[#allocation4 + $0x3f4] ss:$8 sps:$4 sm:$0xff]  }
  0xff   :  { %v342_v58 = vmax.f32 %v245_v50, %v334_v53  ;;  %v349_v0 = vpack.c.bf16 %v341_v55, %v341_v55  ;;  %v1870_v50 = vld [vmem:[#allocation4 + $0x300] ss:$8 sps:$4 sm:$0xff]   ;;  %v1873_v53 = vld [vmem:[#allocation4 + $0x2d0] ss:$8 sps:$4 sm:$0xff]   ;;  %v1881_v55 = vld [vmem:[#allocation4 + $0x2c4] ss:$8 sps:$4 sm:$0xff]  }
 0x100   :  { %v2098_v60 = vpop.f32.mrf.mxu1  ;;  %v1884_v56 = vld [vmem:[#allocation4 + $0x3e4] ss:$8 sps:$4 sm:$0xff]  }
 0x101   :  { %v350_v61 = vpack.c.bf16 %v342_v58, %v342_v58  ;;  %1220 = vmatpush1.bf16.msra.mxu0 %v1822_v54  ;;  %v1876_v54 = vld [vmem:[#allocation4 + $0x3f0] ss:$8 sps:$4 sm:$0xff]   ;;  %v1882_v58 = vld [vmem:[#allocation4 + $0x3e0] ss:$8 sps:$4 sm:$0xff]  }
 0x102   :  { %1221 = vmatprep.subr.bf16.mxu0 %v1827_v57  ;;  %v285_v3 = vpop.f32.mrf.mxu1  ;;  %v1879_v57 = vld [vmem:[#allocation4 + $0x2c0] ss:$8 sps:$4 sm:$0xff]  }
 0x103   :  { %1208 = vmatprep.mubr.bf16.mxu1 %v350_v61  ;;  %v286_v4 = vadd.f32 %v285_v3, %v106_v59  ;;  %v101_v59 = vsub.s32 4, %v2077_v22  ;;  %v1887_v61 = vld [vmem:[#allocation4 + $0x2b4] ss:$8 sps:$4 sm:$0xff]   ;;  %v1896_v3 = vld [vmem:[#allocation4 + $0x3c4] ss:$8 sps:$4 sm:$0xff]  }
 0x104   :  { %1209 = vmatmul.mubr.bf16.vlgmr.msra.gmra.mxu1 %v349_v0  ;;  %v287_v6 = vpop.f32.mrf.mxu1  ;;  %v1888_v0 = vld [vmem:[#allocation4 + $0x3d0] ss:$8 sps:$4 sm:$0xff]  }
 0x105   :  { %1222 = vmatpush1.bf16.msra.mxu0 %v1825_v62  ;;  %1259 = vmatpush1.bf16.msra.mxu1 %v1828_v63  ;;  %v336_v9 = vmul.f32 0.01, %v286_v4  ;;  %v1890_v62 = vld [vmem:[#allocation4 + $0x3d4] ss:$8 sps:$4 sm:$0xff]   ;;  %v1885_v63 = vld [vmem:[#allocation4 + $0x2b0] ss:$8 sps:$4 sm:$0xff]  }
 0x106   :  { %1223 = vmatprep.subr.bf16.mxu0 %v1833_v1  ;;  %1260 = vmatprep.subr.bf16.mxu1 %v1836_v2  ;;  %v288_v12 = vpop.f32.mrf.mxu1  ;;  %v102_v1 = vrot.slane %v2083_v24, %v101_v59  ;;  %v1893_v2 = vld [vmem:[#allocation4 + $0x2a4] ss:$8 sps:$4 sm:$0xff]  }
 0x107   :  { %v344_v13 = vmax.f32 %v286_v4, %v336_v9  ;;  %v1891_v4 = vld [vmem:[#allocation4 + $0x2a0] ss:$8 sps:$4 sm:$0xff]   ;;  %v1902_v9 = vld [vmem:[#allocation4 + $0x3b4] ss:$8 sps:$4 sm:$0xff]  }
 0x108   :  { %v2102_v15 = vpop.f32.mrf.mxu1  ;;  %v284_v6 = vadd.f32 %v2098_v60, %v102_v1  ;;  %v1903_v60 = vld [vmem:[#allocation4 + $0x280] ss:$8 sps:$4 sm:$0xff]  }
 0x109   :  { %1224 = vmatpush1.bf16.msra.mxu0 %v1831_v7  ;;  %1261 = vmatpush1.bf16.msra.mxu1 %v1834_v8  ;;  %v352_v18 = vpack.c.bf16 %v344_v13, %v344_v13  ;;  %v109_v7 = vsub.s32 6, %v2077_v22  ;;  %v1899_v8 = vld [vmem:[#allocation4 + $0x294] ss:$8 sps:$4 sm:$0xff]  }
 0x10a   :  { %1225 = vmatprep.subr.bf16.mxu0 %v1839_v10  ;;  %1262 = vmatprep.subr.bf16.mxu1 %v1842_v11  ;;  %v326_v26 = vpop.f32.mrf.mxu1  ;;  %v1897_v10 = vld [vmem:[#allocation4 + $0x290] ss:$8 sps:$4 sm:$0xff]   ;;  %v335_v12 = vmul.f32 0.01, %v284_v6 }
 0x10b   :  { %v327_v27 = vadd.f32 %v326_v26, %v114_v14  ;;  %1249 = vmatprep.mubr.bf16.mxu0 %v352_v18  ;;  %v1900_v11 = vld [vmem:[#allocation4 + $0x3b0] ss:$8 sps:$4 sm:$0xff]   ;;  %v110_v13 = vrot.slane %v2083_v24, %v109_v7  ;;  %v1905_v14 = vld [vmem:[#allocation4 + $0x284] ss:$8 sps:$4 sm:$0xff]  }
 0x10c   :  { %v328_v28 = vpop.f32.mrf.mxu1  ;;  %v343_v18 = vmax.f32 %v284_v6, %v335_v12  ;;  %v1909_v26 = vld [vmem:[#allocation4 + $0x390] ss:$8 sps:$4 sm:$0xff]   ;;  %v1914_v24 = vld [vmem:[#allocation4 + $0x384] ss:$8 sps:$4 sm:$0xff]  }
 0x10d   :  { %1226 = vmatpush1.bf16.msra.mxu0 %v1837_v16  ;;  %1263 = vmatpush1.bf16.msra.mxu1 %v1840_v17  ;;  %v338_v31 = vmul.f32 0.01, %v327_v27  ;;  %v1908_v16 = vld [vmem:[#allocation4 + $0x3a4] ss:$8 sps:$4 sm:$0xff]   ;;  %v1906_v17 = vld [vmem:[#allocation4 + $0x3a0] ss:$8 sps:$4 sm:$0xff]  }
 0x10e   :  { %1227 = vmatprep.subr.bf16.mxu0 %v1845_v19  ;;  %1264 = vmatprep.subr.bf16.mxu1 %v1848_v20  ;;  %v329_v34 = vpop.f32.mrf.mxu1  ;;  %v325_v19 = vadd.f32 %v2102_v15, %v110_v13  ;;  %v1911_v20 = vld [vmem:[#allocation4 + $0x394] ss:$8 sps:$4 sm:$0xff]  }
 0x10f   :  { %v346_v35 = vmax.f32 %v327_v27, %v338_v31  ;;  %v351_v27 = vpack.c.bf16 %v343_v18, %v343_v18  ;;  %v1916_v15 = vld [vmem:[#allocation6 + $0x38] sm:$0xff]   ;;  %v1918_v34 = vld [vmem:[#allocation6 + $0x30] sm:$0xff]   ;;  %v1496_v18 = vld [vmem:[%s2158_s7] sm:$0xff] }
 0x110   :  { %v337_v28 = vmul.f32 0.01, %v325_v19  ;;  %vm1497_vm5 = vcmp.eq.f32.partialorder %v1496_v18, 0.0 }
 0x111   :  { %1228 = vmatpush1.bf16.msra.mxu0 %v1843_v29  ;;  %1265 = vmatpush1.bf16.msra.mxu1 %v1846_v30  ;;  %v354_v38 = vpack.c.bf16 %v346_v35, %v346_v35  ;;  %v1912_v29 = vld [vmem:[#allocation4 + $0x380] ss:$8 sps:$4 sm:$0xff]  }
 0x112   :  { %1229 = vmatprep.subr.bf16.mxu0 %v1851_v32  ;;  %1266 = vmatprep.subr.bf16.mxu1 %v1854_v33  ;;  %v345_v30 = vmax.f32 %v325_v19, %v337_v28  ;;  %v1915_v32 = vld [vmem:[#allocation6 + $0x78] sm:$0xff]   ;;  %v1917_v33 = vld [vmem:[#allocation6 + $0x70] sm:$0xff]   ;;  %v1919_v35 = vld [vmem:[#allocation6 + $0x68] sm:$0xff]  }
 0x113   :  { %1290 = vmatprep.mubr.bf16.mxu1 %v354_v38  ;;  %v1922_v38 = vld [vmem:[#allocation6 + $0x20] sm:$0xff]  }
 0x114   :  { %v353_v31 = vpack.c.bf16 %v345_v30, %v345_v30 }
 0x115   :  { %1230 = vmatpush1.bf16.msra.mxu0 %v1849_v36  ;;  %1267 = vmatpush1.bf16.msra.mxu1 %v1852_v37  ;;  %v1920_v36 = vld [vmem:[#allocation6 + $0x28] sm:$0xff]   ;;  %v1921_v37 = vld [vmem:[#allocation6 + $0x60] sm:$0xff]  }
 0x116   :  { %1231 = vmatprep.subr.bf16.mxu0 %v1857_v39  ;;  %1268 = vmatprep.subr.bf16.mxu1 %v1860_v40  ;;  %v1923_v39 = vld [vmem:[#allocation6 + $0x58] sm:$0xff]  }
 0x117   :  { %v1924_v40 = vld [vmem:[#allocation6 + $0x18] sm:$0xff]  }
 0x119   :  { %1232 = vmatpush1.bf16.msra.mxu0 %v1855_v41  ;;  %1269 = vmatpush1.bf16.msra.mxu1 %v1858_v42  ;;  %v1925_v41 = vld [vmem:[#allocation6 + $0x50] sm:$0xff]  }
 0x11a   :  { %1233 = vmatprep.subr.bf16.mxu0 %v1863_v43  ;;  %1270 = vmatprep.subr.bf16.mxu1 %v1866_v44  ;;  %v1926_v42 = vld [vmem:[#allocation6 + $0x10] sm:$0xff]   ;;  %v1927_v43 = vld [vmem:[#allocation6 + $0x48] sm:$0xff]  }
 0x11b   :  { %v1928_v44 = vld [vmem:[#allocation6 + $0x8] sm:$0xff]  }
 0x11d   :  { %1234 = vmatpush2.bf16.msra.mxu0 %v1861_v45  ;;  %1271 = vmatpush1.bf16.msra.mxu1 %v1864_v46  ;;  %v1929_v45 = vld [vmem:[#allocation6 + $0x40] sm:$0xff]  }
 0x11e   :  { %1235 = vmatprep.subr.bf16.mxu0 %v1869_v47  ;;  %1272 = vmatprep.subr.bf16.mxu1 %v1872_v48  ;;  %v1930_v46 = vld [vmem:[#allocation6] sm:$0xff]  }
 0x121   :  { %1236 = vmatpush2.bf16.msra.mxu0 %v1867_v49  ;;  %1273 = vmatpush1.bf16.msra.mxu1 %v1870_v50 }
 0x122   :  { %1237 = vmatprep.subr.bf16.mxu0 %v1875_v51  ;;  %1274 = vmatprep.subr.bf16.mxu1 %v1878_v52 }
 0x125   :  { %1238 = vmatpush2.bf16.msra.mxu0 %v1873_v53  ;;  %1275 = vmatpush2.bf16.msra.mxu1 %v1876_v54 }
 0x126   :  { %1239 = vmatprep.subr.bf16.mxu0 %v1881_v55  ;;  %1276 = vmatprep.subr.bf16.mxu1 %v1884_v56  ;;  %v483_v55 = vld [vmem:[%s2155_s4] sm:$0x3] }
 0x127   :  { %v488_v56 = vrot.slane %v483_v55, %v85_v23 }
 0x129   :  { %1240 = vmatpush2.bf16.msra.mxu0 %v1879_v57  ;;  %1277 = vmatpush2.bf16.msra.mxu1 %v1882_v58  ;;  %v492_v58 = vrot.slane %v483_v55, %v89_v25 }
 0x12a   :  { %1241 = vmatprep.subr.bf16.mxu0 %v1887_v61  ;;  %1278 = vmatprep.subr.bf16.mxu1 %v1890_v62 }
 0x12d   :  { %1242 = vmatpush2.bf16.msra.mxu0 %v1885_v63  ;;  %1279 = vmatpush2.bf16.msra.mxu1 %v1888_v0 }
 0x12e   :  { %1243 = vmatprep.subr.bf16.mxu0 %v1893_v2  ;;  %1280 = vmatprep.subr.bf16.mxu1 %v1896_v3 }
 0x131   :  { %1244 = vmatpush2.bf16.msra.mxu0 %v1891_v4  ;;  %1281 = vmatpush2.bf16.msra.mxu1 %v1894_v5 }
 0x132   :  { %1245 = vmatprep.subr.bf16.mxu0 %v1899_v8  ;;  %1282 = vmatprep.subr.bf16.mxu1 %v1902_v9 }
 0x135   :  { %1246 = vmatpush2.bf16.msra.mxu0 %v1897_v10  ;;  %1283 = vmatpush2.bf16.msra.mxu1 %v1900_v11 }
 0x136   :  { %1247 = vmatprep.subr.bf16.mxu0 %v1905_v14  ;;  %1284 = vmatprep.subr.bf16.mxu1 %v1908_v16  ;;  %v1481_v14 = vand.u32 127, %v83_v21 }
 0x138   :  { %vm1483_vm1 = vcmp.ge.s32.totalorder %v1481_v14, 8  ;;  %vm1484_vm2 = vcmp.lt.s32.totalorder %v1481_v14, 24  ;;  %vm1482_vm3 = vcmp.lt.s32.totalorder %v1481_v14, 8 }
 0x139   :  { %1248 = vmatpush2.bf16.msra.mxu0 %v1903_v60  ;;  %1285 = vmatpush2.bf16.msra.mxu1 %v1906_v17  ;;  %v1671_v60 = vld [vmem:[%s2157_s6] ss:$0 sm:$0xff]  ;;  %vm2124_vm4 = vmand %vm1483_vm1, %vm1484_vm2 }
 0x13a   :  { %1286 = vmatprep.subr.bf16.mxu1 %v1911_v20  ;;  %1689 = vmatprep.subr.bf16.mxu0 %v1915_v32  ;;  %vm2131_vm6 = vmand %vm2124_vm4, %vm1497_vm5 }
 0x13c   :  { %1250 = vmatmul.mubr.bf16.vlgmr.msra.gmra.mxu0 %v351_v27 }
 0x13d   :  { %1287 = vmatpush2.bf16.msra.mxu1 %v1909_v26  ;;  %1690 = vmatpush3.bf16.msra.mxu0 %v1916_v15 }
 0x13e   :  { %1288 = vmatprep.subr.bf16.mxu1 %v1914_v24  ;;  %1691 = vmatprep.subr.bf16.mxu0 %v1917_v33 }
 0x141   :  { %1289 = vmatpush2.bf16.msra.mxu1 %v1912_v29  ;;  %1692 = vmatpush3.bf16.msra.mxu0 %v1918_v34 }
 0x142   :  { %1693 = vmatprep.subr.bf16.mxu0 %v1919_v35 }
 0x144   :  { %1291 = vmatmul.mubr.bf16.vlgmr.msra.gmra.mxu1 %v353_v31  ;;  %v2013_v31 = vmov 0.0  }
 0x145   :  { %1694 = vmatpush3.bf16.msra.mxu0 %v1920_v36  ;;  %v1688_v32 = vsel %vm2131_vm6, 1.0, %v2013_v31 }
 0x146   :  { %1695 = vmatprep.subr.bf16.mxu0 %v1921_v37 }
 0x149   :  { %1696 = vmatpush3.bf16.msra.mxu0 %v1922_v38 }
 0x14a   :  { %1697 = vmatprep.subr.bf16.mxu0 %v1923_v39 }
 0x14d   :  { %1698 = vmatpush3.bf16.msra.mxu0 %v1924_v40 }
 0x14e   :  { %1699 = vmatprep.subr.bf16.mxu0 %v1925_v41 }
 0x151   :  { %1700 = vmatpush3.bf16.msra.mxu0 %v1926_v42 }
 0x152   :  { %1701 = vmatprep.subr.bf16.mxu0 %v1927_v43 }
 0x155   :  { %1702 = vmatpush3.bf16.msra.mxu0 %v1928_v44 }
 0x156   :  { %1703 = vmatprep.subr.bf16.mxu0 %v1929_v45 }
 0x159   :  { %1704 = vmatpush3.bf16.msra.mxu0 %v1930_v46 }
 0x1bc   :  { %v1169_v47 = vpop.f32.mrf.mxu0 }
 0x1bd   :  { %v1170_v61 = vadd.f32 %v1169_v47, %v488_v56 }
 0x1be   :  { %v1171_v48 = vpop.f32.mrf.mxu0 }
 0x1bf   :  { %v1172_v63 = vadd.f32 %v1171_v48, %v492_v58 }
 0x1c0   :  { %v1173_v49 = vpop.f32.mrf.mxu0 }
 0x1c2   :  { %v1174_v50 = vpop.f32.mrf.mxu0 }
 0x1c4   :  { %v1210_v51 = vpop.f32.mrf.mxu1 }
 0x1c5   :  { %v1211_v0 = vadd.f32 %v1210_v51, %v1170_v61 }
 0x1c6   :  { %v1212_v52 = vpop.f32.mrf.mxu1 }
 0x1c7   :  { %v1213_v2 = vadd.f32 %v1212_v52, %v1172_v63 }
 0x1c8   :  { %v1214_v53 = vpop.f32.mrf.mxu1 }
 0x1ca   :  { %v1215_v54 = vpop.f32.mrf.mxu1 }
 0x1fc   :  { %v1251_v57 = vpop.f32.mrf.mxu0 }
 0x1fd   :  { %v1252_v3 = vadd.f32 %v1251_v57, %v1211_v0 }
 0x1fe   :  { %v1253_v59 = vpop.f32.mrf.mxu0 }
 0x1ff   :  { %v1254_v5 = vadd.f32 %v1253_v59, %v1213_v2 }
 0x200   :  { %v1255_v62 = vpop.f32.mrf.mxu0 }
 0x202   :  { %v1256_v1 = vpop.f32.mrf.mxu0 }
 0x204   :  { %v1292_v4 = vpop.f32.mrf.mxu1 }
 0x205   :  { %v1293_v6 = vadd.f32 %v1292_v4, %v1252_v3 }
 0x206   :  { %v1294_v7 = vpop.f32.mrf.mxu1 }
 0x207   :  { %v1299_v8 = vmul.f32 0.01, %v1293_v6  ;;  %v1295_v9 = vadd.f32 %v1294_v7, %v1254_v5 }
 0x208   :  { %v1296_v10 = vpop.f32.mrf.mxu1 }
 0x209   :  { %v1300_v23 = vmul.f32 0.01, %v1295_v9  ;;  %v1301_v11 = vmax.f32 %v1293_v6, %v1299_v8 }
 0x20a   :  { %v1297_v12 = vpop.f32.mrf.mxu1 }
 0x20b   :  { %v1302_v22 = vmax.f32 %v1295_v9, %v1300_v23  ;;  %v1303_v13 = vpack.c.bf16 %v1301_v11, %v1301_v11 }
 0x20d   :  { %v1304_v25 = vpack.c.bf16 %v1302_v22, %v1302_v22 }
 0x20f   :  { %1472 = vmatprep.mubr.bf16.mxu0 %v1304_v25 }
 0x210   :  { %1473 = vmatmul.mubr.bf16.vlgmr.msra.gmra.mxu0 %v1303_v13 }
 0x2d0   :  { %v1705_v16 = vpop.f32.mrf.mxu0 }
 0x2d2   :  { %v1706_v17 = vpop.f32.mrf.mxu0 }
 0x2d3   :  { %v1707_v19 = vadd.f32 %v1706_v17, %v1705_v16 }
 0x2d4   :  { %v1708_v20 = vpop.f32.mrf.mxu0 }
 0x2d5   :  { %v1475_v26 = vadd.f32 %v1707_v19, %v1671_v60 }
 0x2d6   :  { %v1709_v21 = vpop.f32.mrf.mxu0 }
 0x2d7   :  { %v1486_v28 = vsel %vm1482_vm3, %v1475_v26, -1e+30  ;;  %v1504_v24 = vand.u32 2147483647, %v1475_v26  ;;  %v1499_v40 = vsel %vm2131_vm6, %v1475_v26, 0.0 }
 0x2d8   :  { %1487 = vmax.xlane.f32.xlu0 %v1486_v28 }
 0x2d9   :  { %v1505_v30 = vsel %vm2131_vm6, %v1504_v24, 0.0 }
 0x2da   :  { %1506 = vadd.xlane.f32.xlu1 %v1505_v30 }
 0x2dc   :  { %1502 = vadd.xlane.f32.xlu0 %v1688_v32 }
 0x361   :  { %v1488_v15 = vpop.xlane.xlu0 %1487 }
 0x362   :  { %v1489_v33 = vsub.f32 %v1486_v28, %v1488_v15 }
 0x363   :  { %v1507_v38 = vpop.xlane.xlu1 %1506 }
 0x364   :  { %v1490_v34 = vmul.f32 1.442695, %v1489_v33  ;;  %vm1508_vm7 = vcmp.gt.f32.partialorder %v1507_v38, 0.0 }
 0x365   :  { %v1503_v36 = vpop.xlane.xlu0 %1502  ;;  %vm1511_vm9 = vmxor %vm1508_vm7, %vm2014_vm8 }
 0x366   :  { %1931 = vpow2.f32 %v1490_v34  ;;  %v1509_v37 = vmax.f32 %v1503_v36, 1.0  ;;  %vm1514_vm10 = vmand %vm1511_vm9, %vm2131_vm6 }
 0x368   :  { %1933 = vrcp.f32 %v1509_v37 }
 0x373   :  { %v1932_v35 = vpop.eup %1931 }
 0x374   :  { %1492 = vadd.xlane.f32.xlu1 %v1932_v35 }
 0x375   :  { %v1934_v39 = vpop.eup %1933 }
 0x376   :  { %v1515_v41 = vsel %vm1514_vm10, %v1934_v39, %v1499_v40 }
 0x377   :  { %v1518_v42 = vmax.f32 %v1515_v41, 1e-30  ;;  %vm1516_vm11 = vcmp.gt.f32.partialorder %v1515_v41, 0.0 }
 0x378   :  { %vm1517_vm12 = vmand %vm2131_vm6, %vm1516_vm11 }
 0x379   :  { %1935 = vlog2.f32 %v1518_v42 }
 0x386   :  { %v1936_v44 = vpop.eup %1935 }
 0x387   :  { %v1520_v45 = vmul.f32 0.6931472, %v1936_v44 }
 0x389   :  { %v1521_v46 = vsel %vm1517_vm12, %v1520_v45, -1e+30 }
 0x38a   :  { %v1522_v49 = vsel %vm2124_vm4, %v1521_v46, 0.0 }
 0x3fd   :  { %v1493_v43 = vpop.xlane.xlu1 %1492 }
 0x3fe   :  { %1937 = vrcp.f32 %v1493_v43 }
 0x40b   :  { %v1938_v47 = vpop.eup %1937 }
 0x40c   :  { %v1495_v48 = vmul.f32 %v1938_v47, %v1932_v35 }
 0x40e   :  { %v1523_v50 = vsel %vm1482_vm3, %v1495_v48, %v1522_v49 }
 0x40f   :  { %1524 = vst [vmem:[%s2159_s8] sm:$0xff] %v1523_v50 }
 0x410   :  { %1529 = vsyncpa [#allocation3], 1 }
 0x411   :  { %1530 = vsyncpa [#allocation5], 1 }

</bundles_post_ra>
